<compile_context>
chip_gen: v6e
topology: v6e:2x2x1
jax: 0.10.0
libtpu: 0.0.40
codegen_flags: <defaults>
</compile_context>

<pallas_src>
import math

import jax
import jax.numpy as jnp
from jax.experimental import pallas as pl
from jax.experimental.pallas import tpu as pltpu


# ------------------------- host-side constant build -------------------------

def _dft_imag_matrix(N: int) -> jax.Array:
    """(N, N) real matrix M_i with M_i @ x == irfft(1j*rfft(x,'ortho'), 'ortho').

    Standard C2R convention (imag parts of DC / Nyquist bins dropped), matching
    torch.fft.irfft / jnp.fft.irfft.  The real-weight path irfft(rfft(x)) is the
    exact identity for real x, so no matrix is needed for it.
    """
    F = N // 2 + 1
    n = jnp.arange(N, dtype=jnp.float32)
    k = jnp.arange(F, dtype=jnp.float32)
    ang = (2.0 * math.pi / N) * jnp.outer(k, n)            # (F, N)
    s = 1.0 / math.sqrt(N)                                 # 'ortho' scaling
    fc = jnp.cos(ang) * s                                  # Re(rfft) = fc @ x
    fs = -jnp.sin(ang) * s                                 # Im(rfft) = fs @ x
    alpha = jnp.full((F,), 2.0, jnp.float32).at[0].set(1.0)
    if N % 2 == 0:
        alpha = alpha.at[F - 1].set(1.0)                   # Nyquist not doubled
    ic = (alpha[None, :] * jnp.cos(ang.T)) * s             # (N, F)
    is_ = -(alpha[None, :] * jnp.sin(ang.T)) * s           # (N, F)
    return is_ @ fc - ic @ fs                              # (N, N)


# --------------------------------- kernel ------------------------------------

def _spectral_kernel(x_ref, m_ref, w_ref, o_ref):
    """One lane-dense tile per grid step.

    x_ref, o_ref: (N, TL)   m_ref: (N, N) bf16 (grid-invariant)
    w_ref: (2, TL) f32  row0 = Re(weight), row1 = Im(weight) (batch-tiled)
    """
    x32 = x_ref[...].astype(jnp.float32)                               # (N, TL)
    u = jnp.dot(m_ref[...], x_ref[...].astype(m_ref.dtype),
                preferred_element_type=jnp.float32)                    # MXU, f32 acc
    y = x32 * w_ref[0:1, :] + u * w_ref[1:2, :]                        # VPU combine
    o_ref[...] = y.astype(o_ref.dtype)


# -------------------------------- wrapper -------------------------------------

def _lane_tile(L: int) -> int:
    """Lane-dense tile of the B*C axis: multiple of 128, prefer >=2 grid steps."""
    for t in (512, 256, 128):
        if L % t == 0 and L // t >= 2:
            return t
    for t in (512, 256, 128):
        if L % t == 0:
            return t
    return L   # full (untiled) lane dim is always legal


def adaptive_spectral_block(x, complex_weight, *, matmul_dtype=jnp.bfloat16):
    """x: (B, N, C) real; complex_weight: (C, 2) with [:,0]=Re, [:,1]=Im."""
    B, N, C = x.shape
    out_dtype = x.dtype
    L = B * C
    TL = _lane_tile(L)

    # DFT filter matrix (imag path only); bf16 MXU operand, f32 accumulation.
    M = _dft_imag_matrix(N).astype(matmul_dtype)                    # (N, N)

    # (B, N, C) -> (N, B*C): one wide lane-dense RHS instead of B tiny matmuls.
    x2 = jnp.transpose(x, (1, 0, 2)).reshape(N, L)
    # per-channel weights, repeated per batch to match the (b, c) lane order
    W = jnp.tile(jnp.transpose(complex_weight.astype(jnp.float32)), (1, B))  # (2, L)

    grid = (L // TL,)

    # VMEM budget: 2x (double-buffered) x/out/W tiles + 2x resident M + headroom.
    itemsize = jnp.dtype(out_dtype).itemsize
    work = (2 * M.size * M.dtype.itemsize
            + 2 * N * TL * x.dtype.itemsize
            + 2 * N * TL * itemsize
            + 2 * 2 * TL * 4)
    vmem_limit = int(min(100 * 1024 * 1024, max(32 * 1024 * 1024, 2 * work)))

    flops = 2 * N * N * L + 3 * N * L
    bytes_accessed = (x2.size * x2.dtype.itemsize + M.nbytes + W.nbytes
                      + N * L * itemsize)

    y2 = pl.pallas_call(
        _spectral_kernel,
        out_shape=jax.ShapeDtypeStruct((N, L), out_dtype),
        grid_spec=pltpu.PrefetchScalarGridSpec(
            num_scalar_prefetch=0,
            grid=grid,
            in_specs=[
                pl.BlockSpec((N, TL), lambda l: (0, l)),     # x: lane tile
                pl.BlockSpec((N, N), lambda l: (0, 0)),      # M: grid-invariant
                pl.BlockSpec((2, TL), lambda l: (0, l)),     # W: lane tile
            ],
            out_specs=pl.BlockSpec((N, TL), lambda l: (0, l)),
        ),
        compiler_params=pltpu.CompilerParams(
            dimension_semantics=("parallel",),
            vmem_limit_bytes=vmem_limit),
        cost_estimate=pl.CostEstimate(
            flops=int(flops), transcendentals=0,
            bytes_accessed=int(bytes_accessed)),
    )(x2, M, W)

    return jnp.transpose(y2.reshape(N, B, C), (1, 0, 2))


# ---------------------------------- main --------------------------------------

if __name__ == "__main__":
    B, N, C = 2, 16, 128          # (batch, sequence, dim)

    key = jax.random.PRNGKey(0)
    k_w, k_x = jax.random.split(key)
    # trunc_normal_(std=0.02) equivalent (truncated at +-2 std)
    complex_weight = 0.02 * jax.random.truncated_normal(
        k_w, -2.0, 2.0, (C, 2), jnp.float32)
    x = jax.random.normal(k_x, (B, N, C), jnp.float32)

    y = adaptive_spectral_block(x, complex_weight)
    jax.block_until_ready(y)

    # pure-JAX reference mirroring the PyTorch forward
    w = complex_weight[:, 0] + 1j * complex_weight[:, 1]
    x_fft = jnp.fft.rfft(x.astype(jnp.float32), axis=1, norm="ortho")
    y_ref = jnp.fft.irfft(x_fft * w[None, None, :], n=N, axis=1,
                          norm="ortho").astype(x.dtype)

    assert y.shape == (B, N, C)
    err = float(jnp.max(jnp.abs(y - y_ref)))
    assert err < 5e-3, f"max abs err {err}"
    print("KERNEL_OK")
</pallas_src>

<mosaic_0001>
module attributes {stable_mosaic.version = 11 : i64} {
  func.func @_spectral_kernel(%arg0: i32, %arg1: memref<16x128xf32, #tpu.memory_space<vmem>>, %arg2: memref<16x16xbf16, #tpu.memory_space<vmem>>, %arg3: memref<2x128xf32, #tpu.memory_space<vmem>>, %arg4: memref<16x128xf32, #tpu.memory_space<vmem>>) attributes {dimension_semantics = [#tpu.dimension_semantics<parallel>], iteration_bounds = array<i64: 2>, scalar_prefetch = 0 : i64, scratch_operands = 0 : i64, tpu.core_type = #tpu.core_type<tc>, window_params = [{transform_indices = @transform_0, window_bounds = array<i64: 16, 128>}, {pipeline_mode = #tpu.pipeline_mode<synchronous>, transform_indices = @transform_1, window_bounds = array<i64: 16, 16>}, {transform_indices = @transform_2, window_bounds = array<i64: 2, 128>}, {transform_indices = @transform_3, window_bounds = array<i64: 16, 128>}]} {
    %c0 = arith.constant 0 : index
    %c0_0 = arith.constant 0 : index
    %0 = vector.load %arg1[%c0, %c0_0] : memref<16x128xf32, #tpu.memory_space<vmem>>, vector<16x128xf32>
    %c0_1 = arith.constant 0 : index
    %c0_2 = arith.constant 0 : index
    %1 = vector.load %arg2[%c0_1, %c0_2] : memref<16x16xbf16, #tpu.memory_space<vmem>>, vector<16x16xbf16>
    %c0_3 = arith.constant 0 : index
    %c0_4 = arith.constant 0 : index
    %2 = vector.load %arg1[%c0_3, %c0_4] : memref<16x128xf32, #tpu.memory_space<vmem>>, vector<16x128xf32>
    %3 = arith.truncf %2 : vector<16x128xf32> to vector<16x128xbf16>
    %cst = arith.constant dense<0.000000e+00> : vector<16x128xf32>
    %4 = tpu.matmul %1, %3, %cst {dimension_numbers = #tpu.dot_dimension_numbers<[1], [0], [0], [1], [0, 0, 1, 1], [], []>} : vector<16x16xbf16>, vector<16x128xbf16>, vector<16x128xf32> -> vector<16x128xf32>
    %c0_5 = arith.constant 0 : index
    %c0_6 = arith.constant 0 : index
    %5 = vector.load %arg3[%c0_5, %c0_6] : memref<2x128xf32, #tpu.memory_space<vmem>>, vector<1x128xf32>
    %6 = vector.broadcast %5 : vector<1x128xf32> to vector<16x128xf32>
    %7 = arith.mulf %0, %6 : vector<16x128xf32>
    %c1 = arith.constant 1 : index
    %c0_7 = arith.constant 0 : index
    %8 = vector.load %arg3[%c1, %c0_7] : memref<2x128xf32, #tpu.memory_space<vmem>>, vector<1x128xf32>
    %9 = vector.broadcast %8 : vector<1x128xf32> to vector<16x128xf32>
    %10 = arith.mulf %4, %9 : vector<16x128xf32>
    %11 = arith.addf %7, %10 : vector<16x128xf32>
    %c0_8 = arith.constant 0 : index
    %c0_9 = arith.constant 0 : index
    %12 = vector.load %arg4[%c0_8, %c0_9] : memref<16x128xf32, #tpu.memory_space<vmem>>, vector<16x128xf32>
    tpu.vector_store %arg4[%c0_8, %c0_9], %11 {strides = array<i32>} : memref<16x128xf32, #tpu.memory_space<vmem>>, vector<16x128xf32>,
    return
  }
  func.func @transform_0(%arg0: i32) -> (i32, i32) {
    %c0_i32 = arith.constant 0 : i32
    %c0_i32_0 = arith.constant 0 : i32
    return %c0_i32, %arg0 : i32, i32
  }
  func.func @transform_1(%arg0: i32) -> (i32, i32) {
    %c0_i32 = arith.constant 0 : i32
    %c0_i32_0 = arith.constant 0 : i32
    %c0_i32_1 = arith.constant 0 : i32
    return %c0_i32, %c0_i32_0 : i32, i32
  }
  func.func @transform_2(%arg0: i32) -> (i32, i32) {
    %c0_i32 = arith.constant 0 : i32
    %c0_i32_0 = arith.constant 0 : i32
    return %c0_i32, %arg0 : i32, i32
  }
  func.func @transform_3(%arg0: i32) -> (i32, i32) {
    %c0_i32 = arith.constant 0 : i32
    %c0_i32_0 = arith.constant 0 : i32
    return %c0_i32, %arg0 : i32, i32
  }
}

</mosaic_0001>

<bundles_post_ra>
// kernel: tpu_custom_call.1
= control target key start
LH: loop header
LB: loop body
LE: loop exit
PB: predicated region body
PF: predicated region fallthrough
CT: control target
= control target key end

     0   :  { %8 = vsyncpa [#allocation3], 0  ;;  %s947_s0 = inlined_call_operand.hbm [shape: f32[16,256], index: 0, kind: input, shape index: {}]   ;;  %s948_s1 = inlined_call_operand.hbm [shape: bf16[16,16], index: 1, kind: input, shape index: {}]   ;;  %s949_s2 = inlined_call_operand.hbm [shape: f32[2,256], index: 2, kind: input, shape index: {}]   ;;  %s950_s3 = inlined_call_operand.hbm [shape: f32[16,256], index: 3, kind: output, shape index: {}]  }
   0x1   :  { %10 = vsyncpa [#allocation3 + $0x1], 0 }
   0x2   :  { %11 = vsyncpa [#allocation6], 0 }
   0x3   :  { %12 = vsyncpa [#allocation4], 0 }
   0x4   :  { %14 = vsyncpa [#allocation4 + $0x1], 0  ;;  %s719_s12 = smov 0   ;;  %s721_s13 = smov 0  }
   0x5   :  { %s723_s14 = smov 0   ;;  %s725_s15 = smov 0  }
   0x6 LB: > { %s740_s16 = sadd.s32 1, %s683_s15   ;;  %s27_s17 = sadd.s32 1, %s679_s14  ;;  %s683_s15 = sphi %s725_s15, %s972_s15   ;;  %s679_s14 = sphi %s723_s14, %s971_s14   ;;  %s675_s13 = sphi %s721_s13, %s970_s13   ;;  %s671_s12 = sphi %s719_s12, %s969_s12  }
   0x7   : > { %s24_s18 = ssub.s32 %s683_s15, %s740_s16  ;;  %p34_p0 = scmp.ne.s32.totalorder %s679_s14, %s675_s13 }
   0x8   : > { %p25_p1 = scmp.eq.s32.totalorder %s24_s18, 0  ;;  %p35_p2 = scmp.eq.s32.totalorder %s683_s15, 0 }
   0x9   : > { %p482_p4 = scmp.lt.s32.totalorder %s683_s15, 2  ;;  %s150_s20 = sand.u32 1, %s683_s15  }
   0xa   : > { %s751_s19 = scalar_select %p25_p1, %s679_s14, %s27_s17  }
   0xb   : > { %p36_p5 = por %p35_p2, %p34_p0  ;;  %s152_s21 = sand.u32 1, %s679_s14  }
   0xc   : > { %s431_s22 = sshll.u32 %s152_s21, 4  ;;  %s432_s23 = sshll.u32 %s683_s15, 7 }
   0xd   : > { %s764_s26 = scalar_lea.hbm %s947_s0, %s432_s23  ;;  %s154_s27 = scalar_lea.vmem [#allocation2], %s431_s22 }
   0xe   : > { %s160_s28 = sshll.u32 %s154_s27, 4  ;;  %p766_p6 = pnand %p482_p4, %p36_p5  ;;  %s770_s28 = int_to_ptr.vmem [resolvable:$true] %s160_s28 }
   0xf   : > { %s772_s30 = scalar_lea.sflag [#allocation3], %s150_s20  ;;  %s529_s4 = scalar_lea.hbm %s764_s26, 256 }
  0x10   : > { %p530_p7 = scmp.ne.s32.totalorder %s764_s26, %s529_s4  ;;  %p952_p8 = pneg %p766_p6 }
  0x11   : > { %s534_s7 = scalar_lea.hbm %s947_s0, 512  ;;  %p535_p11 = scmp.lt.s32.totalorder %s764_s26, %s947_s0 }
  0x12   : > { %p532_p9 = pnand %p952_p8, %p530_p7  ;;  %p536_p12 = scmp.lt.s32.totalorder %s534_s7, %s529_s4 }
  0x14   : > { %p533_p10 = pneg %p532_p9  ;;  %p537_p13 = por %p536_p12, %p535_p11 }
  0x16   : > { %p538_p1 = pnand %p537_p13, %p533_p10 }
  0x18   : > { %541 = shalt.err (!%p538_p1)
}
  0x19   : > { %s542_s10 = scalar_lea.vmem %s770_s28, 256  ;;  %s685_s11 = smov [#allocation2]  }
  0x1a   : > { %p543_p2 = scmp.ne.s32.totalorder %s770_s28, %s542_s10  ;;  %s547_s17 = sshll.u32 %s685_s11, 4  ;;  %s548_s17 = int_to_ptr.vmem [resolvable:$false] %s547_s17 }
  0x1b   : > { %s549_s18 = scalar_lea.vmem %s548_s17, 512  ;;  %p550_p7 = scmp.lt.s32.totalorder %s770_s28, %s548_s17 }
  0x1c   : > { %p545_p4 = pnand %p543_p2, %p952_p8  ;;  %p551_p9 = scmp.lt.s32.totalorder %s549_s18, %s542_s10 }
  0x1e   : > { %p546_p5 = pneg %p545_p4  ;;  %p552_p3 = por %p551_p9, %p550_p7 }
  0x20   : > { %p553_p11 = pnand %p552_p3, %p546_p5 }
  0x22   : > { %556 = shalt.err (!%p553_p11)
}
  0x23   : > { %s686_s20 = smov 256   ;;  %s687_s22 = smov 128  }
  0x24   : > { %s688_s23 = smov 8   ;;  %s800_s24 = sadd.s32 4294967295, %s683_s15  }
  0x25   : > { %473 = dma.hbm_to_vmem [thread:$0]  (!%p766_p6), %s764_s26, 256, %s770_s28, %s772_s30, %s686_s20, %s687_s22, %s688_s23  }
  0x26   : > { %s427_s25 = sadd.s32 4294967294, %s683_s15   ;;  %p40_p3 = scmp.ne.s32.totalorder %s675_s13, %s671_s12 }
  0x27   : > { %p951_p10 = scmp.eq.s32.totalorder %s800_s24, 0  ;;  %p111_p12 = scmp.eq.s32.totalorder %s800_s24, 1 }
  0x28   : > { %p117_p13 = scmp.eq.s32.totalorder %s427_s25, 1  ;;  %p428_p1 = scmp.ge.s32.totalorder %s683_s15, 1 }
  0x29   : > { %p810_p2 = por %p951_p10, %p40_p3  ;;  %p817_p4 = por %p111_p12, %p34_p0 }
  0x2a   : > { %p821_p5 = por %p117_p13, %p40_p3  ;;  %p124_p7 = scmp.lt.s32.totalorder %s683_s15, 3 }
  0x2b   : > { %s956_s27 = scalar_select %p810_p2, 1, 0 }
  0x2c   : > { %s957_s26 = scalar_select %p817_p4, 1, 0 }
  0x2d   : > { %s958_s28 = scalar_select %p821_p5, 1, 0 }
  0x2e   : > { %p826_p9 = pnand %p428_p1, %p124_p7  ;;  %s689_s5 = smov [#allocation5]  }
  0x2f   : > { %s136_s6 = sshll.u32 %s689_s5, 4  ;;  %s433_s7 = sshll.u32 %s152_s21, 1  ;;  %s137_s6 = int_to_ptr.vmem [resolvable:$true] %s136_s6 }
  0x30   : > { %p466_p11 = pneg %p826_p9  ;;  %s434_s8 = sshll.u32 %s683_s15, 5 }
  0x31   : > { %s844_s17 = scalar_lea.hbm %s949_s2, %s434_s8  ;;  %s174_s18 = scalar_lea.vmem [#allocation7], %s433_s7 }
  0x32   : > { %p837_p0 = pnand %p466_p11, %p951_p10  ;;  %s181_s20 = sshll.u32 %s174_s18, 4  ;;  %s846_s20 = int_to_ptr.vmem [resolvable:$true] %s181_s20 }
  0x33   : > { %s568_s22 = scalar_lea.vmem %s137_s6, 128  ;;  %p576_p7 = scmp.lt.s32.totalorder %s137_s6, %s137_s6 }
  0x34   : > { %p559_p3 = pneg %p837_p0  ;;  %p569_p12 = scmp.ne.s32.totalorder %s137_s6, %s568_s22 }
  0x35   : > { %p577_p11 = scmp.lt.s32.totalorder %s568_s22, %s568_s22 }
  0x36   : > { %p571_p13 = pnand %p569_p12, %p559_p3 }
  0x37   : > { %p578_p10 = por %p577_p11, %p576_p7 }
  0x38   : > { %p572_p1 = pneg %p571_p13 }
  0x3a   : > { %p579_p8 = pnand %p578_p10, %p572_p1 }
  0x3c   : > { %582 = shalt.err (!%p579_p8)
}
  0x3d   : > { %s690_s21 = smov 64   ;;  %s691_s23 = smov 4  }
  0x3e   : > { %469 = dma.hbm_to_vmem [thread:$0]  (!%p837_p0), %s948_s1, 128, %s137_s6, [#allocation6], %s690_s21, %s690_s21, %s691_s23  }
  0x3f   : > { %s583_s7 = scalar_lea.hbm %s844_s17, 32  ;;  %p961_p12 = pneg %p766_p6 }
  0x40   : > { %p584_p3 = scmp.ne.s32.totalorder %s844_s17, %s583_s7  ;;  %s588_s11 = scalar_lea.hbm %s949_s2, 64 }
  0x41   : > { %p589_p8 = scmp.lt.s32.totalorder %s844_s17, %s949_s2  ;;  %p590_p10 = scmp.lt.s32.totalorder %s588_s11, %s583_s7 }
  0x42   : > { %p586_p13 = pnand %p584_p3, %p961_p12 }
  0x43   : > { %p591_p1 = por %p590_p10, %p589_p8 }
  0x44   : > { %p587_p7 = pneg %p586_p13 }
  0x46   : > { %p592_p11 = pnand %p591_p1, %p587_p7 }
  0x48   : > { %595 = shalt.err (!%p592_p11)
}
  0x49   : > { %s596_s6 = scalar_lea.vmem %s846_s20, 32  ;;  %p962_p3 = pmov %p961_p12 }
  0x4a   : > { %p597_p0 = scmp.ne.s32.totalorder %s846_s20, %s596_s6  ;;  %s692_s9 = smov [#allocation7]  }
  0x4b   : > { %s601_s21 = sshll.u32 %s692_s9, 4  ;;  %s602_s21 = int_to_ptr.vmem [resolvable:$false] %s601_s21 }
  0x4c   : > { %p599_p12 = pnand %p597_p0, %p962_p3  ;;  %s603_s23 = scalar_lea.vmem %s602_s21, 64 }
  0x4d   : > { %p604_p5 = scmp.lt.s32.totalorder %s846_s20, %s602_s21  ;;  %p605_p4 = scmp.lt.s32.totalorder %s603_s23, %s596_s6 }
  0x4e   : > { %p600_p13 = pneg %p599_p12 }
  0x4f   : > { %p606_p2 = por %p605_p4, %p604_p5 }
  0x51   : > { %p607_p8 = pnand %p606_p2, %p600_p13 }
  0x53   : > { %610 = shalt.err (!%p607_p8)
}
  0x54   : > { %476 = dma.hbm_to_vmem [thread:$0]  (!%p766_p6), %s844_s17, 32, %s846_s20, %s772_s30  }
  0x55   : > { %190 = sbr.rel (%p826_p9) target bundleno = 319 (0x13f), region = 32  ;;  %s192_s25 = sand.u32 (!%p826_p9), 1, %s800_s24  }
  0x56   : > { %s882_s5 = sand.u32 (!%p826_p9), 1, %s675_s13   ;;  %s193_s8 = scalar_lea.sflag (!%p826_p9), [#allocation3], %s192_s25 }
  0x57   : > { %s436_s7 = sshll.u32 (!%p826_p9), %s882_s5, 4  ;;  %p963_p2 = scmp.ne.s32.totalorder (!%p826_p9), %s956_s27, 0 }
  0x58   : > { %s196_s10 = scalar_lea.vmem (!%p826_p9), [#allocation2], %s436_s7 }
  0x5a   : > { %654 = dma.done.wait (%p963_p2), %s193_s8, 256  }
  0x5b   : > { %656 = vsyncadd (%p963_p2), %s193_s8, 4294967040  ;;  %p964_p6 = scmp.eq.s32.totalorder %s800_s24, 0 }
  0x5d   : > { %658 = dma.done.wait (%p964_p6), [#allocation6], 128   ;;  %p965_p4 = pmov %p964_p6 }
  0x5e   : > { %s438_s29 = sshll.u32 %s882_s5, 1 }
  0x5f   : > { %660 = vsyncadd (%p965_p4), [#allocation6], 4294967168  ;;  %s209_s30 = scalar_lea.vmem [#allocation7], %s438_s29 }
  0x60   : > { %662 = dma.done.wait (%p963_p2), %s193_s8, 32  }
  0x61   : > { %664 = vsyncadd (%p963_p2), %s193_s8, 4294967264  ;;  %v693_v0 = vmov 0.0   ;;  %vm694_vm0 = vmmov 0   ;;  %v238_v1 = vld [vmem:[%s196_s10] sm:$0xff]  ;;  %v239_v2 = vld [vmem:[%s196_s10 + $0x8] sm:$0xff]  ;;  %vm248_vm1 = vcmask 130048  }
  0x62   : > { %450 = vmatprep.subr.bf16.mxu0 %v693_v0  ;;  %452 = vmatprep.mubr.msk.bf16.mxu0 %vm694_vm0, %v693_v0  ;;  %v242_v3 = vpack.c.bf16 %v239_v2, %v238_v1  ;;  %v528_v4 = vld [vmem:[#allocation5] sm:$0xff]   ;;  %v442_v5 = vld [vmem:[%s209_s30] ss:$0 sm:$0xff]  ;;  %v443_v6 = vld [vmem:[%s209_s30 + $0x1] ss:$0 sm:$0xff]  ;;  %s236_s27 = scalar_lea.vmem [#allocation8], %s436_s7 }
  0x63   : > { %v298_v7 = vmul.f32 %v442_v5, %v238_v1  ;;  %s324_s4 = sshll.u32 %s236_s27, 4  ;;  %v299_v11 = vmul.f32 %v442_v5, %v239_v2  ;;  %s445_s17 = sshll.u32 %s800_s24, 7  ;;  %s899_s4 = int_to_ptr.vmem [resolvable:$true] %s324_s4 }
  0x64   : > { %451 = vmatpush3.bf16.msra.mxu0 %v242_v3  ;;  %s904_s18 = scalar_lea.hbm %s950_s3, %s445_s17  ;;  %s312_s22 = scalar_lea.sflag [#allocation4], %s882_s5 }
  0x65   : > { %s611_s6 = scalar_lea.vmem %s899_s4, 256  ;;  %p966_p9 = scmp.ne.s32.totalorder %s957_s26, 0 }
  0x66   : > { %p612_p5 = scmp.ne.s32.totalorder %s899_s4, %s611_s6  ;;  %s695_s24 = smov [#allocation8]  }
  0x67   : > { %453 = vmatmul.mubr.msk.bf16.vlgmr.msra.gmra.mxu0 %vm248_vm1, %v528_v4  ;;  %s615_s9 = sshll.u32 %s695_s24, 4  ;;  %s616_s9 = int_to_ptr.vmem [resolvable:$false] %s615_s9 }
  0x68   : > { %p613_p7 = pnand %p612_p5, %p966_p9  ;;  %s617_s21 = scalar_lea.vmem %s616_s9, 512 }
  0x69   : > { %p618_p1 = scmp.lt.s32.totalorder %s899_s4, %s616_s9  ;;  %p619_p11 = scmp.lt.s32.totalorder %s617_s21, %s611_s6 }
  0x6a   : > { %p614_p10 = pneg %p613_p7 }
  0x6b   : > { %p620_p0 = por %p619_p11, %p618_p1 }
  0x6d   : > { %p621_p3 = pnand %p620_p0, %p614_p10 }
 0x127   : > { %v286_v8 = vpop.f32.mrf.mxu0 }
 0x128   : > { %v305_v9 = vmul.f32 %v443_v6, %v286_v8 }
 0x129   : > { %v454_v10 = vpop.f32.mrf.mxu0 }
 0x12a   : > { %v307_v12 = vadd.f32 %v305_v9, %v298_v7 }
 0x12b   : > { %v289_v13 = vpop.f32.mrf.mxu0 }
 0x12c   : > { %309 = vst [vmem:[%s236_s27] sm:$0xff] %v307_v12  ;;  %v306_v14 = vmul.f32 %v443_v6, %v289_v13 }
 0x12d   : > { %v455_v15 = vpop.f32.mrf.mxu0 }
 0x12e   : > { %v308_v16 = vadd.f32 %v306_v14, %v299_v11 }
 0x130   : > { %310 = vst [vmem:[%s236_s27 + $0x8] sm:$0xff] %v308_v16 }
 0x131   : > { %624 = shalt.err (!%p621_p3)
}
 0x132   : > { %s625_s23 = scalar_lea.hbm %s904_s18, 256  ;;  %s629_s8 = scalar_lea.hbm %s950_s3, 512 }
 0x133   : > { %p626_p12 = scmp.ne.s32.totalorder %s904_s18, %s625_s23  ;;  %p630_p2 = scmp.lt.s32.totalorder %s904_s18, %s950_s3 }
 0x134   : > { %p631_p6 = scmp.lt.s32.totalorder %s629_s8, %s625_s23 }
 0x135   : > { %p627_p13 = pnand %p626_p12, %p966_p9 }
 0x136   : > { %p632_p4 = por %p631_p6, %p630_p2 }
 0x137   : > { %p628_p8 = pneg %p627_p13 }
 0x139   : > { %p633_p5 = pnand %p632_p4, %p628_p8 }
 0x13b   : > { %636 = shalt.err (!%p633_p5)
}
 0x13c   : > { %s696_s30 = smov 128   ;;  %s697_s27 = smov 256  }
 0x13d   : > { %s698_s17 = smov 8  }
 0x13e   : > { %464 = dma.vmem_to_hbm [thread:$0]  (%p966_p9), %s899_s4, 256, %s904_s18, %s312_s22, %s696_s30, %s697_s27, %s698_s17  }
 0x13f PF: > { %s339_s20 = sand.u32 1, %s671_s12   ;;  %p967_p7 = scmp.ne.s32.totalorder %s958_s28, 0 }
 0x140   : > { %p968_p10 = scmp.ge.s32.totalorder %s683_s15, 2  ;;  %s340_s11 = scalar_lea.sflag [#allocation4], %s339_s20 }
 0x142   : > { %p478_p1 = pnand %p968_p10, %p967_p7 }
 0x144   : > { %p479_p11 = pneg %p478_p1 }
 0x146   : > { %666 = dma.done.wait (%p479_p11), %s340_s11, 256  }
 0x147   : > { %668 = vsyncadd (%p479_p11), %s340_s11, 4294967040  ;;  %p17_p0 = scmp.ge.s32.totalorder %s740_s16, 4   ;;  %s969_s12 = smov %s675_s13 }
 0x148   : > { %s970_s13 = smov %s679_s14  ;;  %s971_s14 = smov %s751_s19 }
 0x149   : > { %s972_s15 = smov %s740_s16  ;;  %19 = sbr.rel (!%p17_p0) target bundleno = 6 (0x6), region = 92 }
 0x14e   :  { %345 = vsyncpa [#allocation3], 1 }
 0x14f   :  { %347 = vsyncpa [#allocation3 + $0x1], 1 }
 0x150   :  { %348 = vsyncpa [#allocation6], 1 }
 0x151   :  { %349 = vsyncpa [#allocation4], 1 }
 0x152   :  { %351 = vsyncpa [#allocation4 + $0x1], 1 }

</bundles_post_ra>
